<compile_context>
chip_gen: v6e
topology: v6e:2x2x1
jax: 0.10.0
libtpu: 0.0.40
codegen_flags: <defaults>
</compile_context>

<pallas_src>
import functools

import jax
import jax.numpy as jnp
from jax.experimental import pallas as pl
from jax.experimental.pallas import tpu as pltpu


# ----------------------------------------------------------------------------
# Fused kernel: single invocation, whole batch resident in VMEM, scalar to SMEM.
# ----------------------------------------------------------------------------
def _triplet_loss_kernel(a_ref, p_ref, n_ref, o_ref, *, margin, eps, inv_batch):
    a = a_ref[...]                                        # (B, S, L) f32

    # Positive branch first; fully reduce it before touching `negative` so
    # dp and dn are never live together (keeps vreg pressure minimal).
    dp = a - p_ref[...] + eps                             # (B, S, L)
    sp = jnp.sum(jnp.sum(dp * dp, axis=2, keepdims=True),
                 axis=1, keepdims=True)                   # (B, 1, 1)
    d_pos = jnp.sqrt(sp)

    dn = a - n_ref[...] + eps                             # (B, S, L)
    sn = jnp.sum(jnp.sum(dn * dn, axis=2, keepdims=True),
                 axis=1, keepdims=True)                   # (B, 1, 1)
    d_neg = jnp.sqrt(sn)

    losses = jnp.maximum(d_pos - d_neg + margin, 0.0)     # (B, 1, 1)
    # Batch mean, written as a scalar straight to SMEM.
    o_ref[0, 0] = jnp.sum(losses) * inv_batch


def triplet_loss(anchor, positive, negative, *, margin=0.2, eps=1e-6):
    """Pallas TPU implementation of TripletLoss.forward (returns a scalar)."""
    B = anchor.shape[0]
    a = anchor.reshape(B, -1).astype(jnp.float32)
    p = positive.reshape(B, -1).astype(jnp.float32)
    n = negative.reshape(B, -1).astype(jnp.float32)
    F = a.shape[1]

    # Sublane/lane-dense layout: (B, F//128, 128).  For F=1024 each batch row
    # is exactly one full (8,128) vreg.  Done here (free), not in the kernel.
    if F % 128 == 0:
        S, L = F // 128, 128
    else:
        S, L = 1, F  # fallback: still correct, just lane-padded in VMEM
    a = a.reshape(B, S, L)
    p = p.reshape(B, S, L)
    n = n.reshape(B, S, L)

    kernel = functools.partial(
        _triplet_loss_kernel,
        margin=float(margin), eps=float(eps), inv_batch=1.0 / B)

    out = pl.pallas_call(
        kernel,
        out_shape=jax.ShapeDtypeStruct((1, 1), jnp.float32),
        # No grid: single invocation, whole arrays resident in VMEM (no
        # 1-step pipeline machinery / double buffering).
        in_specs=[
            pl.BlockSpec(memory_space=pltpu.MemorySpace.VMEM),
            pl.BlockSpec(memory_space=pltpu.MemorySpace.VMEM),
            pl.BlockSpec(memory_space=pltpu.MemorySpace.VMEM),
        ],
        out_specs=pl.BlockSpec(memory_space=pltpu.MemorySpace.SMEM),
    )(a, p, n)
    # Slice to a rank-0 value to match nn.Module's scalar return (one trivial
    # host-side op; the kernel itself emits the scalar via SMEM).
    return out[0, 0]


# ----------------------------------------------------------------------------
# Pure-JAX reference (literal translation of the PyTorch module) for checking.
# ----------------------------------------------------------------------------
def _triplet_loss_ref(anchor, positive, negative, margin=0.2, eps=1e-6):
    B = anchor.shape[0]
    a = anchor.reshape(B, -1)
    p = positive.reshape(B, -1)
    n = negative.reshape(B, -1)
    d_pos = jnp.sqrt(jnp.sum((a - p + eps) ** 2, axis=1))
    d_neg = jnp.sqrt(jnp.sum((a - n + eps) ** 2, axis=1))
    return jnp.mean(jnp.maximum(d_pos - d_neg + margin, 0.0))


# ----------------------------------------------------------------------------
if __name__ == "__main__":
    B, C, H, W = 2, 4, 16, 16          # feature dim after flatten = 1024
    margin = 0.2

    key = jax.random.PRNGKey(0)
    ka, kp, kn = jax.random.split(key, 3)
    anchor = jax.random.normal(ka, (B, C, H, W), dtype=jnp.float32)
    positive = anchor + 0.1 * jax.random.normal(kp, (B, C, H, W),
                                                dtype=jnp.float32)
    negative = jax.random.normal(kn, (B, C, H, W), dtype=jnp.float32)

    loss = triplet_loss(anchor, positive, negative, margin=margin)
    jax.block_until_ready(loss)

    ref = _triplet_loss_ref(anchor, positive, negative, margin=margin)
    assert jnp.allclose(loss, ref, atol=1e-5, rtol=1e-5), (loss, ref)

    print("KERNEL_OK")
</pallas_src>

<mosaic_0001>
module attributes {stable_mosaic.version = 11 : i64} {
  func.func @_triplet_loss_kernel(%arg0: memref<2x8x128xf32, #tpu.memory_space<vmem>>, %arg1: memref<2x8x128xf32, #tpu.memory_space<vmem>>, %arg2: memref<2x8x128xf32, #tpu.memory_space<vmem>>, %arg3: memref<1x1xf32, #tpu.memory_space<smem>>) attributes {dimension_semantics = [], scalar_prefetch = 0 : i64, scratch_operands = 0 : i64, tpu.core_type = #tpu.core_type<tc>} {
    %c0 = arith.constant 0 : index
    %c0_0 = arith.constant 0 : index
    %c0_1 = arith.constant 0 : index
    %0 = vector.load %arg0[%c0, %c0_0, %c0_1] : memref<2x8x128xf32, #tpu.memory_space<vmem>>, vector<2x8x128xf32>
    %c0_2 = arith.constant 0 : index
    %c0_3 = arith.constant 0 : index
    %c0_4 = arith.constant 0 : index
    %1 = vector.load %arg1[%c0_2, %c0_3, %c0_4] : memref<2x8x128xf32, #tpu.memory_space<vmem>>, vector<2x8x128xf32>
    %2 = arith.subf %0, %1 : vector<2x8x128xf32>
    %cst = arith.constant 9.99999997E-7 : f32
    %3 = vector.broadcast %cst : f32 to vector<2x8x128xf32>
    %4 = arith.addf %2, %3 : vector<2x8x128xf32>
    %5 = arith.mulf %4, %4 : vector<2x8x128xf32>
    %cst_5 = arith.constant dense<0.000000e+00> : vector<2x8xf32>
    %6 = vector.multi_reduction <add>, %5, %cst_5 [2] : vector<2x8x128xf32> to vector<2x8xf32>
    %7 = vector.shape_cast %6 : vector<2x8xf32> to vector<2x8x1xf32>
    %cst_6 = arith.constant dense<0.000000e+00> : vector<2x1xf32>
    %8 = vector.multi_reduction <add>, %7, %cst_6 [1] : vector<2x8x1xf32> to vector<2x1xf32>
    %9 = vector.shape_cast %8 : vector<2x1xf32> to vector<2x1x1xf32>
    %10 = math.sqrt %9 : vector<2x1x1xf32>
    %c0_7 = arith.constant 0 : index
    %c0_8 = arith.constant 0 : index
    %c0_9 = arith.constant 0 : index
    %11 = vector.load %arg2[%c0_7, %c0_8, %c0_9] : memref<2x8x128xf32, #tpu.memory_space<vmem>>, vector<2x8x128xf32>
    %12 = arith.subf %0, %11 : vector<2x8x128xf32>
    %cst_10 = arith.constant 9.99999997E-7 : f32
    %13 = vector.broadcast %cst_10 : f32 to vector<2x8x128xf32>
    %14 = arith.addf %12, %13 : vector<2x8x128xf32>
    %15 = arith.mulf %14, %14 : vector<2x8x128xf32>
    %cst_11 = arith.constant dense<0.000000e+00> : vector<2x8xf32>
    %16 = vector.multi_reduction <add>, %15, %cst_11 [2] : vector<2x8x128xf32> to vector<2x8xf32>
    %17 = vector.shape_cast %16 : vector<2x8xf32> to vector<2x8x1xf32>
    %cst_12 = arith.constant dense<0.000000e+00> : vector<2x1xf32>
    %18 = vector.multi_reduction <add>, %17, %cst_12 [1] : vector<2x8x1xf32> to vector<2x1xf32>
    %19 = vector.shape_cast %18 : vector<2x1xf32> to vector<2x1x1xf32>
    %20 = math.sqrt %19 : vector<2x1x1xf32>
    %21 = arith.subf %10, %20 : vector<2x1x1xf32>
    %cst_13 = arith.constant 2.000000e-01 : f32
    %22 = vector.broadcast %cst_13 : f32 to vector<2x1x1xf32>
    %23 = arith.addf %21, %22 : vector<2x1x1xf32>
    %cst_14 = arith.constant 0.000000e+00 : f32
    %24 = vector.broadcast %cst_14 : f32 to vector<2x1x1xf32>
    %25 = arith.maximumf %23, %24 : vector<2x1x1xf32>
    %26 = vector.shape_cast %25 : vector<2x1x1xf32> to vector<1x2x1x1xf32>
    %cst_15 = arith.constant dense<0.000000e+00> : vector<1xf32>
    %27 = vector.multi_reduction <add>, %26, %cst_15 [1, 2, 3] : vector<1x2x1x1xf32> to vector<1xf32>
    %28 = vector.shape_cast %27 : vector<1xf32> to vector<1x1x1x1xf32>
    %29 = vector.extract %28[0, 0, 0, 0] : f32 from vector<1x1x1x1xf32>
    %cst_16 = arith.constant 5.000000e-01 : f32
    %30 = arith.mulf %29, %cst_16 : f32
    %c0_17 = arith.constant 0 : index
    %c0_18 = arith.constant 0 : index
    %31 = memref.load %arg3[%c0_17, %c0_18] : memref<1x1xf32, #tpu.memory_space<smem>>
    memref.store %30, %arg3[%c0_17, %c0_18] : memref<1x1xf32, #tpu.memory_space<smem>>
    return
  }
}

</mosaic_0001>

<bundles_post_ra>
// kernel: tpu_custom_call.1
= control target key start
LH: loop header
LB: loop body
LE: loop exit
PB: predicated region body
PF: predicated region fallthrough
CT: control target
= control target key end

     0   :  { %8 = vsyncpa [#allocation3], 0  ;;  %s299_s0 = inlined_call_operand.hbm [shape: f32[2,8,128], index: 0, kind: input, shape index: {}]   ;;  %s300_s1 = inlined_call_operand.hbm [shape: f32[2,8,128], index: 1, kind: input, shape index: {}]   ;;  %s301_s2 = inlined_call_operand.hbm [shape: f32[2,8,128], index: 2, kind: input, shape index: {}]   ;;  %s302_s3 = inlined_call_operand.hbm [shape: f32[1,1], index: 3, kind: output, shape index: {}]  }
   0x1   :  { %9 = vsyncpa [#allocation6], 0 }
   0x2   :  { %10 = vsyncpa [#allocation4], 0  ;;  %s261_s12 = smov [#allocation5]   ;;  %s262_s14 = smov [#allocation2]  }
   0x3   :  { %s28_s13 = sshll.u32 %s261_s12, 4  ;;  %s16_s15 = sshll.u32 %s262_s14, 4  ;;  %s29_s13 = int_to_ptr.vmem [resolvable:$true] %s28_s13  ;;  %s17_s15 = int_to_ptr.vmem [resolvable:$true] %s16_s15 }
   0x4   :  { %s195_s16 = scalar_lea.vmem %s29_s13, 256  ;;  %p200_p1 = scmp.lt.s32.totalorder %s29_s13, %s29_s13 }
   0x5   :  { %p196_p0 = scmp.ne.s32.totalorder %s29_s13, %s195_s16  ;;  %p201_p2 = scmp.lt.s32.totalorder %s195_s16, %s195_s16 }
   0x7   :  { %p202_p3 = por %p201_p2, %p200_p1 }
   0x9   :  { %p203_p4 = pnand %p202_p3, %p196_p0 }
   0xb   :  { %206 = shalt.err (!%p203_p4)
}
   0xc   :  { %s263_s17 = smov 128   ;;  %s264_s18 = smov 8  }
   0xd   :  { %34 = dma.hbm_to_vmem [thread:$0]  %s300_s1, 256, %s29_s13, [#allocation6], %s263_s17, %s263_s17, %s264_s18  }
   0xe   :  { %s215_s21 = scalar_lea.vmem %s17_s15, 256  ;;  %p220_p6 = scmp.lt.s32.totalorder %s17_s15, %s17_s15 }
   0xf   :  { %p216_p5 = scmp.ne.s32.totalorder %s17_s15, %s215_s21  ;;  %p221_p7 = scmp.lt.s32.totalorder %s215_s21, %s215_s21 }
  0x11   :  { %p222_p8 = por %p221_p7, %p220_p6 }
  0x13   :  { %p223_p9 = pnand %p222_p8, %p216_p5 }
  0x15   :  { %226 = shalt.err (!%p223_p9)
}
  0x16   :  { %22 = dma.hbm_to_vmem [thread:$0]  %s299_s0, 256, %s17_s15, [#allocation3], %s263_s17, %s263_s17, %s264_s18  }
  0x17   :  { %s265_s24 = smov [#allocation7]  }
  0x18   :  { %s40_s25 = sshll.u32 %s265_s24, 4  ;;  %s41_s25 = int_to_ptr.vmem [resolvable:$true] %s40_s25 }
  0x19   :  { %s235_s26 = scalar_lea.vmem %s41_s25, 256  ;;  %p240_p11 = scmp.lt.s32.totalorder %s41_s25, %s41_s25 }
  0x1a   :  { %p236_p10 = scmp.ne.s32.totalorder %s41_s25, %s235_s26  ;;  %p241_p12 = scmp.lt.s32.totalorder %s235_s26, %s235_s26 }
  0x1c   :  { %p242_p13 = por %p241_p12, %p240_p11 }
  0x1e   :  { %p243_p0 = pnand %p242_p13, %p236_p10 }
  0x20   :  { %246 = shalt.err (!%p243_p0)
}
  0x21   :  { %46 = dma.hbm_to_vmem [thread:$0]  %s301_s2, 256, %s41_s25, [#allocation6], %s263_s17, %s263_s17, %s264_s18  }
  0x22   :  { %255 = dma.done.wait [#allocation3], 256  }
  0x23   :  { %256 = vsyncadd [#allocation3], 4294967040 }
  0x24   :  { %257 = dma.done.wait [#allocation6], 512  }
  0x25   :  { %258 = vsyncadd [#allocation6], 4294966784  ;;  %v56_v0 = vld [vmem:[#allocation2] sm:$0xff]  ;;  %v58_v2 = vld [vmem:[#allocation5] sm:$0xff]  ;;  %vm140_vm8 = vcmask 0   ;;  %s266_s28 = smov [#allocation8]  }
  0x26   :  { %v96_v1 = vld [vmem:[#allocation7] sm:$0xff]  ;;  %v60_v4 = vsub.f32 %v56_v0, %v58_v2  ;;  %v57_v5 = vld [vmem:[#allocation2 + $0x8] sm:$0xff]  ;;  %v59_v7 = vld [vmem:[#allocation5 + $0x8] sm:$0xff] }
  0x27   :  { %v98_v3 = vsub.f32 %v56_v0, %v96_v1  ;;  %v97_v6 = vld [vmem:[#allocation7 + $0x8] sm:$0xff]  ;;  %v61_v9 = vsub.f32 %v57_v5, %v59_v7 }
  0x28   :  { %v99_v8 = vsub.f32 %v57_v5, %v97_v6  ;;  %v62_v11 = vadd.f32 1e-06, %v60_v4 }
  0x29   :  { %v100_v10 = vadd.f32 1e-06, %v98_v3  ;;  %v63_v13 = vadd.f32 1e-06, %v61_v9 }
  0x2a   :  { %v101_v12 = vadd.f32 1e-06, %v99_v8  ;;  %v64_v15 = vmul.f32 %v62_v11, %v62_v11 }
  0x2b   :  { %v102_v14 = vmul.f32 %v100_v10, %v100_v10  ;;  %v65_v17 = vmul.f32 %v63_v13, %v63_v13 }
  0x2c   :  { %66 = vadd.xlane.f32.xlu0 %v64_v15  ;;  %v103_v16 = vmul.f32 %v101_v12, %v101_v12 }
  0x2d   :  { %104 = vadd.xlane.f32.xlu1 %v102_v14 }
  0x30   :  { %68 = vadd.xlane.f32.xlu0 %v65_v17 }
  0x31   :  { %106 = vadd.xlane.f32.xlu1 %v103_v16 }
  0xb5   :  { %v67_v19 = vpop.xlane.xlu0 %66 }
  0xb6   :  { %v105_v18 = vpop.xlane.xlu1 %104  ;;  %v70_v21 = vrot.slane %v67_v19, 4 }
  0xb7   :  { %v108_v20 = vrot.slane %v105_v18, 4 }
  0xb8   :  { %v71_v23 = vadd.f32 %v70_v21, %v67_v19 }
  0xb9   :  { %v109_v22 = vadd.f32 %v108_v20, %v105_v18  ;;  %v69_v25 = vpop.xlane.xlu0 %68 }
  0xba   :  { %v107_v24 = vpop.xlane.xlu1 %106  ;;  %v72_v27 = vrot.slane %v71_v23, 2  ;;  %v76_v29 = vrot.slane %v69_v25, 4 }
  0xbb   :  { %v110_v26 = vrot.slane %v109_v22, 2  ;;  %v114_v28 = vrot.slane %v107_v24, 4 }
  0xbc   :  { %v73_v31 = vadd.f32 %v72_v27, %v71_v23  ;;  %v77_v33 = vadd.f32 %v76_v29, %v69_v25 }
  0xbd   :  { %v111_v30 = vadd.f32 %v110_v26, %v109_v22  ;;  %v115_v32 = vadd.f32 %v114_v28, %v107_v24 }
  0xbe   :  { %v74_v35 = vrot.slane %v73_v31, 1  ;;  %v78_v37 = vrot.slane %v77_v33, 2 }
  0xbf   :  { %v112_v34 = vrot.slane %v111_v30, 1  ;;  %v116_v36 = vrot.slane %v115_v32, 2 }
  0xc0   :  { %v75_v39 = vadd.f32 %v74_v35, %v73_v31  ;;  %v79_v41 = vadd.f32 %v78_v37, %v77_v33 }
  0xc1   :  { %v113_v38 = vadd.f32 %v112_v34, %v111_v30  ;;  %v117_v40 = vadd.f32 %v116_v36, %v115_v32 }
  0xc2   :  { %v80_v43 = vrot.slane %v79_v41, 1  ;;  %vm84_vm1 = vcmp.eq.f32.partialorder %v75_v39, inf  ;;  %v87_v51 = vand.u32 2147483648, %v75_v39  ;;  %vm86_vm3 = vcmp.eq.f32.partialorder %v75_v39, 0.0 }
  0xc3   :  { %179 = vrsqrt.f32 %v113_v38  ;;  %v118_v42 = vrot.slane %v117_v40, 1  ;;  %vm122_vm0 = vcmp.eq.f32.partialorder %v113_v38, inf  ;;  %v125_v50 = vand.u32 2147483648, %v113_v38 }
  0xc4   :  { %181 = vrsqrt.f32 %v75_v39  ;;  %v81_v45 = vadd.f32 %v80_v43, %v79_v41  ;;  %vm124_vm2 = vcmp.eq.f32.partialorder %v113_v38, 0.0 }
  0xc5   :  { %v119_v44 = vadd.f32 %v118_v42, %v117_v40 }
  0xc6   :  { %vm91_vm5 = vcmp.eq.f32.partialorder %v81_v45, inf  ;;  %v94_v62 = vand.u32 2147483648, %v81_v45  ;;  %vm93_vm7 = vcmp.eq.f32.partialorder %v81_v45, 0.0 }
  0xc7   :  { %183 = vrsqrt.f32 %v119_v44  ;;  %vm129_vm4 = vcmp.eq.f32.partialorder %v119_v44, inf  ;;  %v132_v60 = vand.u32 2147483648, %v119_v44  ;;  %vm131_vm6 = vcmp.eq.f32.partialorder %v119_v44, 0.0 }
  0xc8   :  { %185 = vrsqrt.f32 %v81_v45 }
  0xd0   :  { %v180_v46 = vpop.eup %179 }
  0xd1   :  { %v182_v47 = vpop.eup %181  ;;  %v121_v48 = vmul.f32 %v180_v46, %v113_v38 }
  0xd2   :  { %v83_v49 = vmul.f32 %v182_v47, %v75_v39 }
  0xd3   :  { %v123_v52 = vsel %vm122_vm0, %v113_v38, %v121_v48 }
  0xd4   :  { %v184_v53 = vpop.eup %183  ;;  %v85_v54 = vsel %vm84_vm1, %v75_v39, %v83_v49  ;;  %v126_v55 = vsel %vm124_vm2, %v125_v50, %v123_v52 }
  0xd5   :  { %v186_v56 = vpop.eup %185  ;;  %v88_v57 = vsel %vm86_vm3, %v87_v51, %v85_v54  ;;  %v128_v58 = vmul.f32 %v184_v53, %v119_v44 }
  0xd6   :  { %v90_v59 = vmul.f32 %v186_v56, %v81_v45  ;;  %v134_v61 = vsub.f32 %v88_v57, %v126_v55 }
  0xd7   :  { %v130_v63 = vsel %vm129_vm4, %v119_v44, %v128_v58 }
  0xd8   :  { %v92_v0 = vsel %vm91_vm5, %v81_v45, %v90_v59  ;;  %v133_v1 = vsel %vm131_vm6, %v132_v60, %v130_v63  ;;  %v136_v2 = vadd.f32 0.2, %v134_v61 }
  0xd9   :  { %v95_v3 = vsel %vm93_vm7, %v94_v62, %v92_v0 }
  0xda   :  { %v135_v4 = vsub.f32 %v95_v3, %v133_v1  ;;  %v138_v6 = vmax.f32 %v136_v2, 0.0 }
  0xdc   :  { %v137_v5 = vadd.f32 0.2, %v135_v4  ;;  %v141_v8 = vsel %vm140_vm8, %v138_v6, 0.0 }
  0xde   :  { %v139_v7 = vmax.f32 %v137_v5, 0.0 }
  0xe0   :  { %v142_v9 = vsel %vm140_vm8, %v139_v7, 0.0 }
  0xe1   :  { %v143_v10 = vadd.f32 %v142_v9, %v141_v8 }
  0xe3   :  { %144 = vadd.xlane.f32.xlu0 %v143_v10 }
 0x16c   :  { %v145_v11 = vpop.xlane.xlu0 %144 }
 0x16d   :  { %v146_v12 = vrot.slane %v145_v11, 4 }
 0x16f   :  { %v147_v13 = vadd.f32 %v146_v12, %v145_v11 }
 0x171   :  { %v148_v14 = vrot.slane %v147_v13, 2 }
 0x173   :  { %v149_v15 = vadd.f32 %v148_v14, %v147_v13 }
 0x175   :  { %v150_v16 = vrot.slane %v149_v15, 1 }
 0x177   :  { %v151_v17 = vadd.f32 %v150_v16, %v149_v15 }
 0x179   :  { %171 = vpush %v151_v17 }
 0x1aa   :  { %s172_s0 = spop %171 }
 0x1ab   :  { %s153_s2 = smul.f32 0.5, %s172_s0 }
 0x1ad   :  { %155 = sst [smem:[#allocation8]] %s153_s2 }
 0x1ae   :  { %163 = dma.smem_to_hbm %s266_s28, 16, %s302_s3, [#allocation4]  }
 0x1af   :  { %259 = dma.done.wait [#allocation4], 16  }
 0x1b0   :  { %260 = vsyncadd [#allocation4], 4294967280 }
 0x1b1   :  { %167 = sfence }
 0x1b2   :  { %168 = vsyncpa [#allocation3], 1 }
 0x1b3   :  { %169 = vsyncpa [#allocation6], 1 }
 0x1b4   :  { %170 = vsyncpa [#allocation4], 1 }

</bundles_post_ra>
